<compile_context>
chip_gen: v6e
topology: v6e:2x2x1
jax: 0.10.0
libtpu: 0.0.40
codegen_flags: <defaults>
</compile_context>

<pallas_src>
import functools

import jax
import jax.numpy as jnp
from jax.experimental import pallas as pl
from jax.experimental.pallas import tpu as pltpu

N_COLS = 8                              # n_cols (conv H)
N_ROWS = 8                              # n_rows (conv W)
CONV_OUT = 6                            # self.conv_out_size
KSIZE = 3
N_IN = N_COLS * N_ROWS                  # 64 input pixels
N_HID = CONV_OUT * N_COLS * N_ROWS      # 384 post-conv features, (c, h, w) order
N_OUT = N_COLS * N_ROWS                 # 64 linear outputs
N_OUT_PAD = 128                         # lane-dense padded output width


def _round_up(x, m):
    return (x + m - 1) // m * m


def _pick_batch_tile(B):
    """Batch tile: minimal padding for small B; even #tiles (<=1024 rows each)
    for large B so v7x's two TensorCores both get work."""
    bt = _round_up(B, 16)               # 16-row multiple is safe for f32 & bf16
    if bt <= 512:
        return bt
    n_tiles = 2
    while _round_up(-(-B // n_tiles), 16) > 1024:
        n_tiles += 2
    return _round_up(-(-B // n_tiles), 16)


def _network_kernel(x_ref, m_ref, cb_ref, w2_ref, b2_ref, out_ref):
    """Fused conv(1->6, 3x3, pad=1) + ReLU + Linear as two MXU matmuls.

    x_ref  : (bt, 64)        matmul dtype  flattened (h, w) input pixels
    m_ref  : (64, 384)       matmul dtype  conv folded to a dense matrix
    cb_ref : (1, 384)        f32           conv bias broadcast over (h, w)
    w2_ref : (384, 128)      matmul dtype  linear weight^T, zero-padded lanes
    b2_ref : (1, 128)        f32           linear bias, zero-padded lanes
    out_ref: (bt, 128)       f32
    """
    pre = jnp.dot(x_ref[...], m_ref[...], preferred_element_type=jnp.float32)
    h = jnp.maximum(pre + cb_ref[...], 0.0)                 # f32 elementwise
    out = jnp.dot(h.astype(w2_ref.dtype), w2_ref[...],
                  preferred_element_type=jnp.float32) + b2_ref[...]
    out_ref[...] = out.astype(out_ref.dtype)


def _conv_as_matrix(conv_w, conv_b):
    """Fold Conv2d(1, C, 3x3, stride=1, padding=1) on an HxW image into a dense
    (H*W, C*H*W) matrix + (C*H*W,) bias.  Output columns follow the PyTorch
    `.view(-1, C*H*W)` flatten order (c, h, w); zero padding is baked in via
    the validity mask."""
    H, W, C = N_COLS, N_ROWS, CONV_OUT
    cw = conv_w.reshape(C, KSIZE, KSIZE).astype(jnp.float32)          # (C, 3, 3)
    dh = jnp.arange(H)[:, None] - jnp.arange(H)[None, :] + 1          # (h_in, h_out) -> ky
    dw = jnp.arange(W)[:, None] - jnp.arange(W)[None, :] + 1          # (w_in, w_out) -> kx
    vh = (dh >= 0) & (dh < KSIZE)
    vw = (dw >= 0) & (dw < KSIZE)
    dh_c = jnp.clip(dh, 0, KSIZE - 1)
    dw_c = jnp.clip(dw, 0, KSIZE - 1)
    # T[c, hi, ho, wi, wo] = cw[c, dh_c[hi, ho], dw_c[wi, wo]]
    T = cw[:, dh_c][:, :, :, dw_c]                                    # (C, H, H, W, W)
    mask = (vh[:, :, None, None] & vw[None, None, :, :]).astype(jnp.float32)
    T = T * mask[None]
    # (c, hi, ho, wi, wo) -> (hi, wi, c, ho, wo) -> (H*W, C*H*W)
    M = T.transpose(1, 3, 0, 2, 4).reshape(H * W, C * H * W)
    cb = jnp.repeat(conv_b.astype(jnp.float32), H * W)                # (C*H*W,)
    return M, cb


def prepare_params(conv_w, conv_b, lin_w, lin_b, matmul_dtype=jnp.float32):
    """One-time weight preprocessing (run at module init, NOT per forward)."""
    M, cb = _conv_as_matrix(conv_w, conv_b)
    cb = cb.reshape(1, N_HID)                                         # f32
    w2 = lin_w.reshape(N_OUT, N_HID).astype(jnp.float32).T            # (384, 64)
    w2 = jnp.pad(w2, ((0, 0), (0, N_OUT_PAD - N_OUT)))                # (384, 128)
    b2 = jnp.pad(lin_b.reshape(1, N_OUT).astype(jnp.float32),
                 ((0, 0), (0, N_OUT_PAD - N_OUT)))                    # (1, 128), f32
    return (M.astype(matmul_dtype), cb, w2.astype(matmul_dtype), b2)


@jax.jit
def network_forward(state, M, cb, w2, b2):
    """state: (B, n_cols, n_rows) or anything reshapeable to (-1, n_cols*n_rows).
    M/cb/w2/b2 come from prepare_params()."""
    matmul_dtype = M.dtype
    x = state.reshape(-1, N_IN).astype(matmul_dtype)                  # (B, 64)
    B = x.shape[0]

    bt = _pick_batch_tile(B)
    b_pad = _round_up(B, bt)
    if b_pad != B:
        x = jnp.pad(x, ((0, b_pad - B), (0, 0)))
    grid = b_pad // bt

    in_itemsize = jnp.dtype(matmul_dtype).itemsize
    cost = pl.CostEstimate(
        flops=2 * b_pad * (N_IN * N_HID + N_HID * N_OUT_PAD),
        transcendentals=0,
        bytes_accessed=(b_pad * N_IN * in_itemsize            # x
                        + b_pad * N_OUT_PAD * 4               # out
                        + (M.size + w2.size) * in_itemsize    # weights
                        + (cb.size + b2.size) * 4))           # biases

    out = pl.pallas_call(
        _network_kernel,
        out_shape=jax.ShapeDtypeStruct((b_pad, N_OUT_PAD), jnp.float32),
        grid_spec=pltpu.PrefetchScalarGridSpec(
            num_scalar_prefetch=0,
            grid=(grid,),
            in_specs=[
                pl.BlockSpec((bt, N_IN), lambda i: (i, 0)),        # x: tiled over batch
                pl.BlockSpec((N_IN, N_HID), lambda i: (0, 0)),     # conv-as-matrix (resident)
                pl.BlockSpec((1, N_HID), lambda i: (0, 0)),        # conv bias (resident)
                pl.BlockSpec((N_HID, N_OUT_PAD), lambda i: (0, 0)),# linear weight^T (resident)
                pl.BlockSpec((1, N_OUT_PAD), lambda i: (0, 0)),    # linear bias (resident)
            ],
            out_specs=pl.BlockSpec((bt, N_OUT_PAD), lambda i: (i, 0)),
        ),
        compiler_params=pltpu.CompilerParams(
            dimension_semantics=("parallel",)),
        cost_estimate=cost,
    )(x, M, cb, w2, b2)
    return out[:B, :N_OUT]


def reference_forward(state, conv_w, conv_b, lin_w, lin_b):
    """Pure-JAX reference mirroring the PyTorch forward (NCHW conv + linear)."""
    B = state.reshape(-1, N_IN).shape[0]
    x = state.reshape(B, 1, N_COLS, N_ROWS).astype(jnp.float32)
    y = jax.lax.conv_general_dilated(
        x, conv_w, window_strides=(1, 1), padding=((1, 1), (1, 1)),
        dimension_numbers=("NCHW", "OIHW", "NCHW"))
    y = jax.nn.relu(y + conv_b.reshape(1, CONV_OUT, 1, 1))
    y = y.reshape(B, N_HID)
    return y @ lin_w.T + lin_b


if __name__ == "__main__":
    key = jax.random.PRNGKey(0)
    k1, k2, k3, k4, k5, k6, k7 = jax.random.split(key, 7)

    # Deterministic, PyTorch-default-style (uniform +/- 1/sqrt(fan_in)) params.
    fan_conv = 1 * KSIZE * KSIZE
    bc = 1.0 / jnp.sqrt(fan_conv)
    conv_w = jax.random.uniform(k2, (CONV_OUT, 1, KSIZE, KSIZE), jnp.float32, -bc, bc)
    conv_b = jax.random.uniform(k3, (CONV_OUT,), jnp.float32, -bc, bc)

    fan_lin = N_HID
    bl = 1.0 / jnp.sqrt(fan_lin)
    lin_w = jax.random.uniform(k4, (N_OUT, fan_lin), jnp.float32, -bl, bl)
    lin_b = jax.random.uniform(k5, (N_OUT,), jnp.float32, -bl, bl)

    # f32 path (tight check) and bf16-operand path (halved DMA bytes on v6e/v7x).
    for matmul_dtype, tol in ((jnp.float32, 2e-4), (jnp.bfloat16, 3e-2)):
        params = prepare_params(conv_w, conv_b, lin_w, lin_b,
                                matmul_dtype=matmul_dtype)
        # B=2: tiny inference path; B=300: single well-fitted tile (minimal
        # padding); B=2048: two 1024-row tiles -> even "parallel" grid for v7x.
        for bsz, kk in ((2, k1), (300, k6), (2048, k7)):
            state = jax.random.normal(kk, (bsz, N_COLS, N_ROWS), jnp.float32)
            out = jax.block_until_ready(network_forward(state, *params))
            ref = reference_forward(state, conv_w, conv_b, lin_w, lin_b)
            assert out.shape == (bsz, N_OUT), out.shape
            err = jnp.max(jnp.abs(out - ref))
            assert jnp.allclose(out, ref, atol=tol, rtol=tol), \
                f"dtype={matmul_dtype.__name__} B={bsz} max abs err = {err}"

    print("KERNEL_OK")
</pallas_src>

<mosaic_0001>
module attributes {stable_mosaic.version = 11 : i64} {
  func.func @_network_kernel(%arg0: i32, %arg1: memref<16x64xf32, #tpu.memory_space<vmem>>, %arg2: memref<64x384xf32, #tpu.memory_space<vmem>>, %arg3: memref<1x384xf32, #tpu.memory_space<vmem>>, %arg4: memref<384x128xf32, #tpu.memory_space<vmem>>, %arg5: memref<1x128xf32, #tpu.memory_space<vmem>>, %arg6: memref<16x128xf32, #tpu.memory_space<vmem>>) attributes {dimension_semantics = [#tpu.dimension_semantics<parallel>], iteration_bounds = array<i64: 1>, scalar_prefetch = 0 : i64, scratch_operands = 0 : i64, tpu.core_type = #tpu.core_type<tc>, window_params = [{transform_indices = @transform_0, window_bounds = array<i64: 16, 64>}, {pipeline_mode = #tpu.pipeline_mode<synchronous>, transform_indices = @transform_1, window_bounds = array<i64: 64, 384>}, {pipeline_mode = #tpu.pipeline_mode<synchronous>, transform_indices = @transform_2, window_bounds = array<i64: 1, 384>}, {pipeline_mode = #tpu.pipeline_mode<synchronous>, transform_indices = @transform_3, window_bounds = array<i64: 384, 128>}, {pipeline_mode = #tpu.pipeline_mode<synchronous>, transform_indices = @transform_4, window_bounds = array<i64: 1, 128>}, {transform_indices = @transform_5, window_bounds = array<i64: 16, 128>}]} {
    %c0 = arith.constant 0 : index
    %c0_0 = arith.constant 0 : index
    %0 = vector.load %arg1[%c0, %c0_0] : memref<16x64xf32, #tpu.memory_space<vmem>>, vector<16x64xf32>
    %c0_1 = arith.constant 0 : index
    %c0_2 = arith.constant 0 : index
    %1 = vector.load %arg2[%c0_1, %c0_2] : memref<64x384xf32, #tpu.memory_space<vmem>>, vector<64x384xf32>
    %cst = arith.constant dense<0.000000e+00> : vector<16x384xf32>
    %2 = tpu.matmul %0, %1, %cst {dimension_numbers = #tpu.dot_dimension_numbers<[1], [0], [0], [1], [0, 0, 1, 1], [], []>} : vector<16x64xf32>, vector<64x384xf32>, vector<16x384xf32> -> vector<16x384xf32>
    %c0_3 = arith.constant 0 : index
    %c0_4 = arith.constant 0 : index
    %3 = vector.load %arg3[%c0_3, %c0_4] : memref<1x384xf32, #tpu.memory_space<vmem>>, vector<1x384xf32>
    %4 = vector.broadcast %3 : vector<1x384xf32> to vector<16x384xf32>
    %5 = arith.addf %2, %4 : vector<16x384xf32>
    %cst_5 = arith.constant 0.000000e+00 : f32
    %6 = vector.broadcast %cst_5 : f32 to vector<16x384xf32>
    %7 = arith.maximumf %5, %6 : vector<16x384xf32>
    %c0_6 = arith.constant 0 : index
    %c0_7 = arith.constant 0 : index
    %8 = vector.load %arg4[%c0_6, %c0_7] : memref<384x128xf32, #tpu.memory_space<vmem>>, vector<384x128xf32>
    %cst_8 = arith.constant dense<0.000000e+00> : vector<16x128xf32>
    %9 = tpu.matmul %7, %8, %cst_8 {dimension_numbers = #tpu.dot_dimension_numbers<[1], [0], [0], [1], [0, 0, 1, 1], [], []>} : vector<16x384xf32>, vector<384x128xf32>, vector<16x128xf32> -> vector<16x128xf32>
    %c0_9 = arith.constant 0 : index
    %c0_10 = arith.constant 0 : index
    %10 = vector.load %arg5[%c0_9, %c0_10] : memref<1x128xf32, #tpu.memory_space<vmem>>, vector<1x128xf32>
    %11 = vector.broadcast %10 : vector<1x128xf32> to vector<16x128xf32>
    %12 = arith.addf %9, %11 : vector<16x128xf32>
    %c0_11 = arith.constant 0 : index
    %c0_12 = arith.constant 0 : index
    %13 = vector.load %arg6[%c0_11, %c0_12] : memref<16x128xf32, #tpu.memory_space<vmem>>, vector<16x128xf32>
    tpu.vector_store %arg6[%c0_11, %c0_12], %12 {strides = array<i32>} : memref<16x128xf32, #tpu.memory_space<vmem>>, vector<16x128xf32>,
    return
  }
  func.func @transform_0(%arg0: i32) -> (i32, i32) {
    %c0_i32 = arith.constant 0 : i32
    %c0_i32_0 = arith.constant 0 : i32
    return %arg0, %c0_i32 : i32, i32
  }
  func.func @transform_1(%arg0: i32) -> (i32, i32) {
    %c0_i32 = arith.constant 0 : i32
    %c0_i32_0 = arith.constant 0 : i32
    %c0_i32_1 = arith.constant 0 : i32
    return %c0_i32, %c0_i32_0 : i32, i32
  }
  func.func @transform_2(%arg0: i32) -> (i32, i32) {
    %c0_i32 = arith.constant 0 : i32
    %c0_i32_0 = arith.constant 0 : i32
    %c0_i32_1 = arith.constant 0 : i32
    return %c0_i32, %c0_i32_0 : i32, i32
  }
  func.func @transform_3(%arg0: i32) -> (i32, i32) {
    %c0_i32 = arith.constant 0 : i32
    %c0_i32_0 = arith.constant 0 : i32
    %c0_i32_1 = arith.constant 0 : i32
    return %c0_i32, %c0_i32_0 : i32, i32
  }
  func.func @transform_4(%arg0: i32) -> (i32, i32) {
    %c0_i32 = arith.constant 0 : i32
    %c0_i32_0 = arith.constant 0 : i32
    %c0_i32_1 = arith.constant 0 : i32
    return %c0_i32, %c0_i32_0 : i32, i32
  }
  func.func @transform_5(%arg0: i32) -> (i32, i32) {
    %c0_i32 = arith.constant 0 : i32
    %c0_i32_0 = arith.constant 0 : i32
    return %arg0, %c0_i32 : i32, i32
  }
}

</mosaic_0001>

<bundles_post_ra>
// kernel: network_forward.1
= control target key start
LH: loop header
LB: loop body
LE: loop exit
PB: predicated region body
PF: predicated region fallthrough
CT: control target
= control target key end

     0   :  { %10 = vsyncpa [#allocation3], 0  ;;  %s712_s0 = inlined_call_operand.vmem [shape: f32[16,64], index: 0, kind: input, shape index: {}]   ;;  %s713_s1 = inlined_call_operand.hbm [shape: f32[64,384], index: 1, kind: input, shape index: {}]   ;;  %s714_s2 = inlined_call_operand.vmem [shape: f32[1,384], index: 2, kind: input, shape index: {}]   ;;  %s715_s3 = inlined_call_operand.hbm [shape: f32[384,128], index: 3, kind: input, shape index: {}]   ;;  %s716_s4 = inlined_call_operand.vmem [shape: f32[1,128], index: 4, kind: input, shape index: {}]   ;;  %s717_s5 = inlined_call_operand.vmem [shape: f32[16,128], index: 5, kind: output, shape index: {}]  }
   0x1   :  { %11 = vsyncpa [#allocation5], 0  ;;  %s645_s18 = smov [#allocation2]  }
   0x2   :  { %s19_s19 = sshll.u32 %s645_s18, 4  ;;  %s20_s19 = int_to_ptr.vmem [resolvable:$true] %s19_s19 }
   0x3   :  { %s609_s20 = scalar_lea.vmem %s20_s19, 3072  ;;  %p614_p1 = scmp.lt.s32.totalorder %s20_s19, %s20_s19 }
   0x4   :  { %p610_p0 = scmp.ne.s32.totalorder %s20_s19, %s609_s20  ;;  %p615_p2 = scmp.lt.s32.totalorder %s609_s20, %s609_s20 }
   0x6   :  { %p616_p3 = por %p615_p2, %p614_p1 }
   0x8   :  { %p617_p4 = pnand %p616_p3, %p610_p0 }
   0xa   :  { %620 = shalt.err (!%p617_p4)
}
   0xb   :  { %s646_s21 = smov 384   ;;  %s647_s22 = smov 24  }
   0xc   :  { %25 = dma.hbm_to_vmem [thread:$0]  %s713_s1, 3072, %s20_s19, [#allocation3], %s646_s21, %s646_s21, %s647_s22  }
   0xd   :  { %s648_s25 = smov [#allocation4]  }
   0xe   :  { %s33_s26 = sshll.u32 %s648_s25, 4  ;;  %s34_s26 = int_to_ptr.vmem [resolvable:$true] %s33_s26 }
   0xf   :  { %s629_s27 = scalar_lea.vmem %s34_s26, 6144  ;;  %p634_p6 = scmp.lt.s32.totalorder %s34_s26, %s34_s26 }
  0x10   :  { %p630_p5 = scmp.ne.s32.totalorder %s34_s26, %s629_s27  ;;  %p635_p7 = scmp.lt.s32.totalorder %s629_s27, %s629_s27 }
  0x12   :  { %p636_p8 = por %p635_p7, %p634_p6 }
  0x14   :  { %p637_p9 = pnand %p636_p8, %p630_p5 }
  0x16   :  { %640 = shalt.err (!%p637_p9)
}
  0x17   :  { %s649_s28 = smov 128   ;;  %s650_s29 = smov 8  }
  0x18   :  { %39 = dma.hbm_to_vmem [thread:$0]  %s715_s3, 6144, %s34_s26, [#allocation5], %s649_s28, %s649_s28, %s650_s29  }
  0x19   :  { %641 = dma.done.wait [#allocation3], 3072  }
  0x1a   :  { %642 = vsyncadd [#allocation3], 4294964224 }
  0x1b   :  { %643 = dma.done.wait [#allocation5], 6144  }
  0x1c   :  { %644 = vsyncadd [#allocation5], 4294961152  ;;  %v651_v0 = vmov 0.0   ;;  %v72_v1 = vld [vmem:[#allocation2 + $0xb0] sm:$0xff]  ;;  %v71_v2 = vld [vmem:[#allocation2 + $0xa8] sm:$0xff]  ;;  %vm91_vm0 = vcmask 523264  }
  0x1d   :  { %162 = vmatprep.mubr.f32.mxu0 %v651_v0  ;;  %v69_v3 = vld [vmem:[#allocation2 + $0x98] sm:$0xff]  ;;  %114 = vmatprep.subr.mxu0 %v72_v1  ;;  %v68_v4 = vld [vmem:[#allocation2 + $0x90] sm:$0xff]  ;;  %v66_v6 = vld [vmem:[#allocation2 + $0x80] sm:$0xff] }
  0x1e   :  { %v73_v5 = vld [vmem:[#allocation2 + $0xb8] sm:$0xff]  ;;  %115 = vmatpush1.msra.mxu0 %v71_v2  ;;  %v70_v7 = vld [vmem:[#allocation2 + $0xa0] sm:$0xff]  ;;  %v67_v9 = vld [vmem:[#allocation2 + $0x88] sm:$0xff] }
  0x1f   :  { %540 = vmatprep.subr.mxu1 %v73_v5  ;;  %116 = vmatprep.subr.mxu0 %v69_v3  ;;  %v65_v8 = vld [vmem:[#allocation2 + $0x78] sm:$0xff]  ;;  %v63_v10 = vld [vmem:[#allocation2 + $0x68] sm:$0xff]  ;;  %v62_v11 = vld [vmem:[#allocation2 + $0x60] sm:$0xff] }
  0x20   :  { %541 = vmatpush3.msra.mxu1 %v73_v5  ;;  %117 = vmatpush1.msra.mxu0 %v68_v4  ;;  %v64_v12 = vld [vmem:[#allocation2 + $0x70] sm:$0xff]  ;;  %v59_v14 = vld [vmem:[#allocation2 + $0x48] sm:$0xff]  ;;  %v61_v15 = vld [vmem:[#allocation2 + $0x58] sm:$0xff] }
  0x21   :  { %542 = vmatprep.subr.mxu1 %v70_v7  ;;  %118 = vmatprep.subr.mxu0 %v66_v6  ;;  %v60_v13 = vld [vmem:[#allocation2 + $0x50] sm:$0xff]  ;;  %v57_v16 = vld [vmem:[#allocation2 + $0x38] sm:$0xff]  ;;  %v58_v18 = vld [vmem:[#allocation2 + $0x40] sm:$0xff] }
  0x22   :  { %543 = vmatpush3.msra.mxu1 %v70_v7  ;;  %119 = vmatpush1.msra.mxu0 %v65_v8  ;;  %v56_v17 = vld [vmem:[#allocation2 + $0x30] sm:$0xff]  ;;  %v54_v19 = vld [vmem:[#allocation2 + $0x20] sm:$0xff]  ;;  %v53_v20 = vld [vmem:[#allocation2 + $0x18] sm:$0xff] }
  0x23   :  { %544 = vmatprep.subr.mxu1 %v67_v9  ;;  %120 = vmatprep.subr.mxu0 %v63_v10  ;;  %v55_v21 = vld [vmem:[#allocation2 + $0x28] sm:$0xff]  ;;  %v50_v23 = vld [vmem:[#allocation2] sm:$0xff]  ;;  %v52_v24 = vld [vmem:[#allocation2 + $0x10] sm:$0xff] }
  0x24   :  { %545 = vmatpush3.msra.mxu1 %v67_v9  ;;  %121 = vmatpush1.msra.mxu0 %v62_v11  ;;  %v51_v22 = vld [vmem:[#allocation2 + $0x8] sm:$0xff]  ;;  %v48_v25 = vld [vmem:[%s712_s0] sm:$0xff]  ;;  %v287_v27 = vld [vmem:[#allocation4 + $0xf8] sm:$0xff]  ;;  %v76_v11 = vlaneseq }
  0x25   :  { %546 = vmatprep.subr.mxu1 %v64_v12  ;;  %122 = vmatprep.subr.mxu0 %v60_v13  ;;  %v49_v26 = vld [vmem:[%s712_s0 + $0x8] sm:$0xff]  ;;  %v271_v28 = vld [vmem:[#allocation4 + $0x78] sm:$0xff]  ;;  %v286_v30 = vld [vmem:[#allocation4 + $0xf0] sm:$0xff] }
  0x26   :  { %547 = vmatpush3.msra.mxu1 %v64_v12  ;;  %123 = vmatpush1.msra.mxu0 %v59_v14  ;;  %v303_v29 = vld [vmem:[#allocation4 + $0x178] sm:$0xff]  ;;  %v270_v31 = vld [vmem:[#allocation4 + $0x70] sm:$0xff]  ;;  %v285_v32 = vld [vmem:[#allocation4 + $0xe8] sm:$0xff]  ;;  %v77_v12 = vshrl.u32 %v76_v11, 7 }
  0x27   :  { %548 = vmatprep.subr.mxu1 %v61_v15  ;;  %124 = vmatprep.subr.mxu0 %v57_v16  ;;  %v302_v33 = vld [vmem:[#allocation4 + $0x170] sm:$0xff]  ;;  %v269_v34 = vld [vmem:[#allocation4 + $0x68] sm:$0xff]  ;;  %v284_v35 = vld [vmem:[#allocation4 + $0xe0] sm:$0xff] }
  0x28   :  { %549 = vmatpush3.msra.mxu1 %v61_v15  ;;  %125 = vmatpush1.msra.mxu0 %v56_v17  ;;  %v301_v36 = vld [vmem:[#allocation4 + $0x168] sm:$0xff]  ;;  %v268_v37 = vld [vmem:[#allocation4 + $0x60] sm:$0xff]  ;;  %v283_v38 = vld [vmem:[#allocation4 + $0xd8] sm:$0xff]  ;;  %v78_v13 = vsub.s32 0, %v77_v12  ;;  %v82_v15 = vsub.s32 1, %v77_v12  ;;  %v86_v16 = vsub.s32 2, %v77_v12 }
  0x29   :  { %550 = vmatprep.subr.mxu1 %v58_v18  ;;  %126 = vmatprep.subr.mxu0 %v54_v19  ;;  %v300_v39 = vld [vmem:[#allocation4 + $0x160] sm:$0xff]  ;;  %v267_v40 = vld [vmem:[#allocation4 + $0x58] sm:$0xff]  ;;  %v282_v41 = vld [vmem:[#allocation4 + $0xd0] sm:$0xff] }
  0x2a   :  { %551 = vmatpush3.msra.mxu1 %v58_v18  ;;  %127 = vmatpush1.msra.mxu0 %v53_v20  ;;  %v299_v42 = vld [vmem:[#allocation4 + $0x158] sm:$0xff]  ;;  %v266_v43 = vld [vmem:[#allocation4 + $0x50] sm:$0xff]  ;;  %v281_v44 = vld [vmem:[#allocation4 + $0xc8] sm:$0xff] }
  0x2b   :  { %552 = vmatprep.subr.mxu1 %v55_v21  ;;  %128 = vmatprep.subr.mxu0 %v51_v22  ;;  %v298_v45 = vld [vmem:[#allocation4 + $0x150] sm:$0xff]  ;;  %v265_v46 = vld [vmem:[#allocation4 + $0x48] sm:$0xff]  ;;  %v280_v47 = vld [vmem:[#allocation4 + $0xc0] sm:$0xff] }
  0x2c   :  { %553 = vmatpush3.msra.mxu1 %v55_v21  ;;  %129 = vmatpush1.msra.mxu0 %v50_v23  ;;  %v297_v48 = vld [vmem:[#allocation4 + $0x148] sm:$0xff]  ;;  %v264_v49 = vld [vmem:[#allocation4 + $0x40] sm:$0xff]  ;;  %v279_v50 = vld [vmem:[#allocation4 + $0xb8] sm:$0xff] }
  0x2d   :  { %554 = vmatprep.subr.mxu1 %v52_v24  ;;  %469 = vmatmul.mubr.msk.f32.vlgmr.msra.gmra.mxu0 %vm91_vm0, %v48_v25  ;;  %v296_v51 = vld [vmem:[#allocation4 + $0x140] sm:$0xff]  ;;  %v263_v52 = vld [vmem:[#allocation4 + $0x38] sm:$0xff]  ;;  %v278_v53 = vld [vmem:[#allocation4 + $0xb0] sm:$0xff] }
  0x2e   :  { %555 = vmatpush3.msra.mxu1 %v52_v24  ;;  %556 = vmatprep.mubr.msk.f32.mxu1 %vm91_vm0, %v48_v25  ;;  %v295_v54 = vld [vmem:[#allocation4 + $0x138] sm:$0xff]  ;;  %v262_v55 = vld [vmem:[#allocation4 + $0x30] sm:$0xff]  ;;  %v277_v56 = vld [vmem:[#allocation4 + $0xa8] sm:$0xff] }
  0x2f   :  { %168 = vmatprep.mubr.f32.mxu0 %v651_v0  ;;  %557 = vmatmul.mubr.msk.f32.vlgmr.msra.gmra.mxu1 %vm91_vm0, %v49_v26  ;;  %v294_v57 = vld [vmem:[#allocation4 + $0x130] sm:$0xff]  ;;  %v261_v58 = vld [vmem:[#allocation4 + $0x28] sm:$0xff]  ;;  %v276_v59 = vld [vmem:[#allocation4 + $0xa0] sm:$0xff] }
  0x30   :  { %484 = vmatprep.subr.mxu0 %v287_v27  ;;  %559 = vmatprep.subr.mxu1 %v303_v29  ;;  %v293_v60 = vld [vmem:[#allocation4 + $0x128] sm:$0xff]  ;;  %v260_v61 = vld [vmem:[#allocation4 + $0x20] sm:$0xff]  ;;  %v275_v62 = vld [vmem:[#allocation4 + $0x98] sm:$0xff] }
  0x31   :  { %485 = vmatpush3.msra.mxu0 %v271_v28  ;;  %560 = vmatpush3.msra.mxu1 %v303_v29  ;;  %v259_v63 = vld [vmem:[#allocation4 + $0x18] sm:$0xff]  ;;  %v292_v0 = vld [vmem:[#allocation4 + $0x120] sm:$0xff]  ;;  %v274_v1 = vld [vmem:[#allocation4 + $0x90] sm:$0xff] }
  0x32   :  { %470 = vmatmul.mubr.msk.f32.gmra.mxu0 %vm91_vm0, %v49_v26  ;;  %486 = vmatprep.subr.mxu0 %v286_v30  ;;  %v258_v2 = vld [vmem:[#allocation4 + $0x10] sm:$0xff]  ;;  %v291_v3 = vld [vmem:[#allocation4 + $0x118] sm:$0xff]  ;;  %v273_v4 = vld [vmem:[#allocation4 + $0x88] sm:$0xff] }
  0x33   :  { %487 = vmatpush3.msra.mxu0 %v270_v31  ;;  %561 = vmatprep.subr.mxu1 %v302_v33  ;;  %v257_v5 = vld [vmem:[#allocation4 + $0x8] sm:$0xff]  ;;  %v290_v6 = vld [vmem:[#allocation4 + $0x110] sm:$0xff]  ;;  %v272_v7 = vld [vmem:[#allocation4 + $0x80] sm:$0xff] }
  0x34   :  { %488 = vmatprep.subr.mxu0 %v285_v32  ;;  %562 = vmatpush3.msra.mxu1 %v302_v33  ;;  %v256_v8 = vld [vmem:[#allocation4] sm:$0xff]  ;;  %v289_v9 = vld [vmem:[#allocation4 + $0x108] sm:$0xff] }
  0x35   :  { %489 = vmatpush3.msra.mxu0 %v269_v34  ;;  %563 = vmatprep.subr.mxu1 %v301_v36  ;;  %v288_v10 = vld [vmem:[#allocation4 + $0x100] sm:$0xff] }
  0x36   :  { %490 = vmatprep.subr.mxu0 %v284_v35  ;;  %564 = vmatpush3.msra.mxu1 %v301_v36  ;;  %v74_v14 = vld [vmem:[%s714_s2] sm:$0x7] }
  0x37   :  { %491 = vmatpush3.msra.mxu0 %v268_v37  ;;  %565 = vmatprep.subr.mxu1 %v300_v39  ;;  %v79_v17 = vrot.slane %v74_v14, %v78_v13  ;;  %v83_v18 = vrot.slane %v74_v14, %v82_v15  ;;  %v87_v19 = vrot.slane %v74_v14, %v86_v16 }
  0x38   :  { %492 = vmatprep.subr.mxu0 %v283_v38  ;;  %566 = vmatpush3.msra.mxu1 %v300_v39 }
  0x39   :  { %493 = vmatpush3.msra.mxu0 %v267_v40  ;;  %567 = vmatprep.subr.mxu1 %v299_v42 }
  0x3a   :  { %494 = vmatprep.subr.mxu0 %v282_v41  ;;  %568 = vmatpush3.msra.mxu1 %v299_v42  ;;  %v473_v41 = vld [vmem:[%s716_s4] ss:$0 sm:$0xff] }
  0x3b   :  { %495 = vmatpush3.msra.mxu0 %v266_v43  ;;  %569 = vmatprep.subr.mxu1 %v298_v45 }
  0x3c   :  { %496 = vmatprep.subr.mxu0 %v281_v44  ;;  %570 = vmatpush3.msra.mxu1 %v298_v45 }
  0x3d   :  { %497 = vmatpush3.msra.mxu0 %v265_v46  ;;  %571 = vmatprep.subr.mxu1 %v297_v48 }
  0x3e   :  { %498 = vmatprep.subr.mxu0 %v280_v47  ;;  %572 = vmatpush3.msra.mxu1 %v297_v48 }
  0x3f   :  { %499 = vmatpush3.msra.mxu0 %v264_v49  ;;  %573 = vmatprep.subr.mxu1 %v296_v51 }
  0x40   :  { %500 = vmatprep.subr.mxu0 %v279_v50  ;;  %574 = vmatpush3.msra.mxu1 %v296_v51 }
  0x41   :  { %501 = vmatpush3.msra.mxu0 %v263_v52  ;;  %575 = vmatprep.subr.mxu1 %v295_v54 }
  0x42   :  { %502 = vmatprep.subr.mxu0 %v278_v53  ;;  %576 = vmatpush3.msra.mxu1 %v295_v54 }
  0x43   :  { %503 = vmatpush3.msra.mxu0 %v262_v55  ;;  %577 = vmatprep.subr.mxu1 %v294_v57 }
  0x44   :  { %504 = vmatprep.subr.mxu0 %v277_v56  ;;  %578 = vmatpush3.msra.mxu1 %v294_v57 }
  0x45   :  { %505 = vmatpush3.msra.mxu0 %v261_v58  ;;  %579 = vmatprep.subr.mxu1 %v293_v60 }
  0x46   :  { %506 = vmatprep.subr.mxu0 %v276_v59  ;;  %580 = vmatpush3.msra.mxu1 %v293_v60 }
  0x47   :  { %507 = vmatpush3.msra.mxu0 %v260_v61  ;;  %581 = vmatprep.subr.mxu1 %v292_v0 }
  0x48   :  { %508 = vmatprep.subr.mxu0 %v275_v62  ;;  %582 = vmatpush3.msra.mxu1 %v292_v0 }
  0x49   :  { %509 = vmatpush3.msra.mxu0 %v259_v63  ;;  %583 = vmatprep.subr.mxu1 %v291_v3 }
  0x4a   :  { %510 = vmatprep.subr.mxu0 %v274_v1  ;;  %584 = vmatpush3.msra.mxu1 %v291_v3 }
  0x4b   :  { %511 = vmatpush3.msra.mxu0 %v258_v2  ;;  %585 = vmatprep.subr.mxu1 %v290_v6 }
  0x4c   :  { %512 = vmatprep.subr.mxu0 %v273_v4  ;;  %586 = vmatpush3.msra.mxu1 %v290_v6 }
  0x4d   :  { %513 = vmatpush3.msra.mxu0 %v257_v5  ;;  %587 = vmatprep.subr.mxu1 %v289_v9 }
  0x4e   :  { %514 = vmatprep.subr.mxu0 %v272_v7  ;;  %588 = vmatpush3.msra.mxu1 %v289_v9 }
  0x4f   :  { %515 = vmatpush3.msra.mxu0 %v256_v8  ;;  %589 = vmatprep.subr.mxu1 %v288_v10 }
  0x50   :  { %590 = vmatpush3.msra.mxu1 %v288_v10 }
  0xed   :  { %v164_v20 = vpop.f32.mrf.mxu0 }
  0xee   :  { %v165_v21 = vadd.f32 %v164_v20, %v79_v17 }
  0xef   :  { %v166_v22 = vpop.f32.mrf.mxu0  ;;  %v558_v23 = vpop.f32.mrf.mxu1 }
  0xf0   :  { %v167_v24 = vadd.f32 %v166_v22, %v83_v18  ;;  %v247_v25 = vadd.f32 %v558_v23, %v87_v19  ;;  %v250_v30 = vmax.f32 %v165_v21, 0.0 }
  0xf1   :  { %v241_v27 = vpop.f32.mrf.mxu1 }
  0xf2   :  { %v170_v26 = vpop.f32.mrf.mxu0  ;;  %v251_v28 = vmax.f32 %v167_v24, 0.0  ;;  %v242_v29 = vadd.f32 %v241_v27, %v87_v19  ;;  %v255_v31 = vmax.f32 %v247_v25, 0.0 }
  0xf3   :  { %v171_v32 = vadd.f32 %v170_v26, %v79_v17 }
  0xf4   :  { %v172_v33 = vpop.f32.mrf.mxu0  ;;  %v252_v34 = vmax.f32 %v242_v29, 0.0  ;;  %375 = vmatprep.mubr.f32.mxu0 %v251_v28 }
  0xf5   :  { %v173_v35 = vadd.f32 %v172_v33, %v83_v18  ;;  %376 = vmatmul.mubr.f32.vlgmr.msra.gmra.mxu0 %v250_v30  ;;  %v253_v37 = vmax.f32 %v171_v32, 0.0 }
  0xf6   :  { %591 = vmatprep.mubr.f32.mxu1 %v252_v34 }
  0xf7   :  { %v254_v36 = vmax.f32 %v173_v35, 0.0  ;;  %592 = vmatmul.mubr.f32.vlgmr.msra.gmra.mxu1 %v255_v31 }
  0xf9   :  { %380 = vmatprep.mubr.f32.mxu0 %v254_v36 }
  0xfa   :  { %381 = vmatmul.mubr.f32.gmra.mxu0 %v253_v37 }
 0x1b5   :  { %v516_v38 = vpop.f32.mrf.mxu0 }
 0x1b7   :  { %v517_v39 = vpop.f32.mrf.mxu0  ;;  %v593_v40 = vpop.f32.mrf.mxu1 }
 0x1b8   :  { %v518_v42 = vadd.f32 %v517_v39, %v516_v38 }
 0x1b9   :  { %v452_v44 = vpop.f32.mrf.mxu1 }
 0x1ba   :  { %v519_v43 = vpop.f32.mrf.mxu0  ;;  %v378_v45 = vadd.f32 %v518_v42, %v473_v41 }
 0x1bc   :  { %v520_v46 = vpop.f32.mrf.mxu0  ;;  %v453_v47 = vadd.f32 %v452_v44, %v378_v45 }
 0x1bd   :  { %v521_v48 = vadd.f32 %v520_v46, %v519_v43 }
 0x1be   :  { %461 = vst [vmem:[%s717_s5] sm:$0xff] %v453_v47 }
 0x1bf   :  { %v383_v49 = vadd.f32 %v521_v48, %v473_v41 }
 0x1c1   :  { %v458_v50 = vadd.f32 %v593_v40, %v383_v49 }
 0x1c3   :  { %462 = vst [vmem:[%s717_s5 + $0x8] sm:$0xff] %v458_v50 }
 0x1c4   :  { %467 = vsyncpa [#allocation3], 1 }
 0x1c5   :  { %468 = vsyncpa [#allocation5], 1 }

</bundles_post_ra>
